<compile_context>
chip_gen: v7x
topology: tpu7x:2x2x1
jax: 0.10.0
libtpu: 0.0.40
codegen_flags: <defaults>
</compile_context>

<pallas_src>
import jax
import jax.numpy as jnp
from jax.experimental import pallas as pl
from jax.experimental.pallas import tpu as pltpu

_LANES = 128


def _h_swish_kernel(x_ref, o_ref):
    x = x_ref[...]
    # PyTorch hardswish: x * relu6(x + 3) / 6.  Weak-typed constants keep the
    # compute in the input dtype (bf16 stays bf16).
    o_ref[...] = (x * (jnp.clip(x + 3.0, 0.0, 6.0) / 6.0)).astype(o_ref.dtype)


def _cdiv(a, b):
    return -(-a // b)


def _round_up(x, m):
    return _cdiv(x, m) * m


def _device_params():
    """Per-generation (target_tile_bytes, vmem_limit_bytes | None, num_tensorcores)."""
    kind = ""
    try:
        kind = (jax.devices()[0].device_kind or "").lower()
    except Exception:
        pass
    if "v7" in kind:
        # 3.2 TB/s HBM per TC: bigger tiles amortize the ~0.35us/step overhead.
        # 4 pipelined buffers x 8 MiB = 32 MiB >= the 32 MiB scoped default,
        # so raise the limit explicitly (still well under 64 MiB physical VMEM).
        return 8 * 1024 * 1024, 48 * 1024 * 1024, 2
    if "v6" in kind:
        # 4 buffers x 4 MiB = 16 MiB, comfortably under the 32 MiB scoped default.
        return 4 * 1024 * 1024, None, 1
    if "v5" in kind and ("lite" in kind or "v5e" in kind):
        # v5e: 16 MiB scoped default -> keep 2 MiB tiles (8 MiB pipelined).
        return 2 * 1024 * 1024, None, 1
    if "v5" in kind or "v4" in kind:
        # v5p / v4 megacore: 2 TensorCores, generous VMEM.
        return 2 * 1024 * 1024, None, 2
    # Unknown chip: conservative defaults that are safe everywhere.
    return 2 * 1024 * 1024, None, 1


def _choose_cols(n):
    """Column width for a zero-copy (rows, cols) reshape of a size-n flat array."""
    if n % _LANES == 0:
        return _LANES  # lane-exact: fully unmasked vst, fully contiguous DMA
    # Ragged total size: pick the widest divisor of n in [128, 8192] so the
    # reshape stays zero-copy; the last block dim equals the full array dim
    # (allowed), lane tail is masked in-kernel instead of padded in HBM.
    hi = min(n, 8192)
    for c in range(hi, _LANES - 1, -1):
        if n % c == 0:
            return c
    return None  # no usable divisor (rare, e.g. large prime numel)


def _pick_tile_rows(rows, sublane, target_rows, num_tc):
    """Largest sublane-aligned row tile <= target; balanced across TCs on megacore."""
    if rows <= sublane:
        return rows
    tile = max(sublane, (min(target_rows, rows) // sublane) * sublane)
    if num_tc > 1 and rows >= num_tc * sublane:
        # Even number of near-equal blocks so neither TensorCore idles.
        nb = _round_up(max(_cdiv(rows, tile), num_tc), num_tc)
        tile = _round_up(_cdiv(rows, nb), sublane)
    return rows if tile >= rows else tile


def h_swish(x: jax.Array, *, block_rows: int | None = None) -> jax.Array:
    """Elementwise h_swish (x * relu6(x + 3) / 6) computed in a Pallas TPU kernel."""
    orig_shape = x.shape
    dtype = x.dtype
    n = x.size
    if n == 0:
        return x

    itemsize = jnp.dtype(dtype).itemsize
    target_bytes, vmem_limit, num_tc = _device_params()

    # --- pad-free lane-dense 2D view (zero-copy reshape of a contiguous array) ---
    cols = _choose_cols(n)
    pad = 0
    if cols is None:
        # Rare fallback: pad only the <128-element ragged tail (extra HBM pass).
        cols = _LANES
        pad = _round_up(n, _LANES) - n
        flat = jnp.pad(x.reshape(-1), (0, pad))
    else:
        flat = x.reshape(-1)
    rows = (n + pad) // cols
    x2d = flat.reshape(rows, cols)

    # Sub-32-bit dtypes pack along sublanes (bf16 -> 16 rows, int8/fp8 -> 32).
    sublane = 8 * max(1, 4 // itemsize)
    cols_padded = _round_up(cols, _LANES)  # VMEM lane footprint per row

    if block_rows is None:
        block_rows = max(sublane, target_bytes // (cols_padded * itemsize))
    tile_rows = _pick_tile_rows(rows, sublane, block_rows, num_tc)

    grid = (_cdiv(rows, tile_rows),)  # Pallas masks the partial last block.

    out2d = pl.pallas_call(
        _h_swish_kernel,
        out_shape=jax.ShapeDtypeStruct((rows, cols), dtype),
        grid=grid,
        in_specs=[pl.BlockSpec((tile_rows, cols), lambda i: (i, 0))],
        out_specs=pl.BlockSpec((tile_rows, cols), lambda i: (i, 0)),
        compiler_params=pltpu.CompilerParams(
            dimension_semantics=("parallel",),
            vmem_limit_bytes=vmem_limit,
        ),
        cost_estimate=pl.CostEstimate(
            flops=5 * n,
            bytes_accessed=2 * n * itemsize,
            transcendentals=0,
        ),
    )(x2d)

    if pad:
        return out2d.reshape(-1)[:n].reshape(orig_shape)
    return out2d.reshape(orig_shape)


def _h_swish_ref(x):
    return x * (jnp.clip(x + 3.0, 0.0, 6.0) / 6.0)


if __name__ == "__main__":
    key = jax.random.PRNGKey(0)
    # NCHW input, matching the PyTorch module's conv-style layout.
    x = jax.random.normal(key, (2, 4, 16, 16), dtype=jnp.float32) * 4.0

    out = jax.block_until_ready(h_swish(x))

    ref = _h_swish_ref(x)
    assert out.shape == x.shape and out.dtype == x.dtype
    assert jnp.allclose(out, ref, atol=1e-6, rtol=1e-6)

    print("KERNEL_OK")
</pallas_src>

<mosaic_0001>
module attributes {stable_mosaic.version = 11 : i64} {
  func.func @_h_swish_kernel(%arg0: i32, %arg1: memref<16x128xf32, #tpu.memory_space<vmem>>, %arg2: memref<16x128xf32, #tpu.memory_space<vmem>>) attributes {dimension_semantics = [#tpu.dimension_semantics<parallel>], iteration_bounds = array<i64: 1>, scalar_prefetch = 0 : i64, scratch_operands = 0 : i64, tpu.core_type = #tpu.core_type<tc>, window_params = [{transform_indices = @transform_0, window_bounds = array<i64: 16, 128>}, {transform_indices = @transform_1, window_bounds = array<i64: 16, 128>}]} {
    %c0 = arith.constant 0 : index
    %c0_0 = arith.constant 0 : index
    %0 = vector.load %arg1[%c0, %c0_0] : memref<16x128xf32, #tpu.memory_space<vmem>>, vector<16x128xf32>
    %cst = arith.constant 3.000000e+00 : f32
    %1 = vector.broadcast %cst : f32 to vector<16x128xf32>
    %2 = arith.addf %0, %1 : vector<16x128xf32>
    %cst_1 = arith.constant 0.000000e+00 : f32
    %cst_2 = arith.constant 6.000000e+00 : f32
    %3 = vector.broadcast %cst_1 : f32 to vector<16x128xf32>
    %4 = arith.maximumf %3, %2 : vector<16x128xf32>
    %5 = vector.broadcast %cst_2 : f32 to vector<16x128xf32>
    %6 = arith.minimumf %5, %4 : vector<16x128xf32>
    %cst_3 = arith.constant 6.000000e+00 : f32
    %7 = vector.broadcast %cst_3 : f32 to vector<16x128xf32>
    %8 = arith.divf %6, %7 : vector<16x128xf32>
    %9 = arith.mulf %0, %8 : vector<16x128xf32>
    %c0_4 = arith.constant 0 : index
    %c0_5 = arith.constant 0 : index
    %10 = vector.load %arg2[%c0_4, %c0_5] : memref<16x128xf32, #tpu.memory_space<vmem>>, vector<16x128xf32>
    tpu.vector_store %arg2[%c0_4, %c0_5], %9 {strides = array<i32>} : memref<16x128xf32, #tpu.memory_space<vmem>>, vector<16x128xf32>,
    return
  }
  func.func @transform_0(%arg0: i32) -> (i32, i32) {
    %c0_i32 = arith.constant 0 : i32
    %c0_i32_0 = arith.constant 0 : i32
    return %arg0, %c0_i32 : i32, i32
  }
  func.func @transform_1(%arg0: i32) -> (i32, i32) {
    %c0_i32 = arith.constant 0 : i32
    %c0_i32_0 = arith.constant 0 : i32
    return %arg0, %c0_i32 : i32, i32
  }
}

</mosaic_0001>

<bundles_post_ra>
// kernel: tpu_custom_call.1
= control target key start
LH: loop header
LB: loop body
LE: loop exit
PB: predicated region body
PF: predicated region fallthrough
CT: control target
= control target key end

     0   :  { %6 = vsyncpa [#allocation3], 0  ;;  %s151_s0 = inlined_call_operand.hbm [shape: f32[16,128], index: 0, kind: input, shape index: {}]   ;;  %s152_s1 = inlined_call_operand.hbm [shape: f32[16,128], index: 1, kind: output, shape index: {}]  }
   0x1   :  { %7 = vsyncpa [#allocation4], 0  ;;  %s107_s6 = smov [#allocation2]   ;;  %s59_s10 = scalar_lea.hbm %s151_s0, 256 }
   0x2   :  { %s13_s7 = sshll.u32 %s107_s6, 4  ;;  %p60_p0 = scmp.ne.s32.totalorder %s151_s0, %s59_s10  ;;  %s14_s7 = int_to_ptr.vmem [resolvable:$true] %s13_s7 }
   0x3   :  { %p63_p1 = scmp.lt.u32.totalorder %s59_s10, %s151_s0 }
   0x5   :  { %p65_p2 = pnand %p63_p1, %p60_p0 }
   0x7   :  { %68 = shalt.err (!%p65_p2)
}
   0x8   :  { %s69_s15 = scalar_lea.vmem %s14_s7, 256  ;;  %p74_p4 = scmp.lt.s32.totalorder %s14_s7, %s14_s7 }
   0x9   :  { %p70_p3 = scmp.ne.s32.totalorder %s14_s7, %s69_s15  ;;  %p75_p5 = scmp.lt.s32.totalorder %s69_s15, %s69_s15 }
   0xb   :  { %p76_p6 = por %p75_p5, %p74_p4 }
   0xd   :  { %p77_p7 = pnand %p76_p6, %p70_p3 }
   0xf   :  { %80 = shalt.err (!%p77_p7)
}
  0x10   :  { %s108_s16 = smov 128   ;;  %s109_s17 = smov 8  }
  0x11   :  { %19 = dma.hbm_to_vmem [thread:$0]  %s151_s0, 256, %s14_s7, [#allocation3], %s108_s16, %s108_s16, %s109_s17  }
  0x12   :  { %103 = dma.done.wait [#allocation3], 256  }
  0x13   :  { %104 = vsyncadd [#allocation3], 4294967040  ;;  %v23_v0 = vld [vmem:[#allocation2] sm:$0xff]  ;;  %v24_v1 = vld [vmem:[#allocation2 + $0x8] sm:$0xff]  ;;  %s110_s20 = smov [#allocation5]  }
  0x14   :  { %v25_v2 = vadd.f32 3.0, %v23_v0  ;;  %v26_v3 = vadd.f32 3.0, %v24_v1  ;;  %s43_s21 = sshll.u32 %s110_s20, 4  ;;  %s44_s21 = int_to_ptr.vmem [resolvable:$true] %s43_s21 }
  0x15   :  { %s81_s0 = scalar_lea.vmem %s44_s21, 256  ;;  %p86_p9 = scmp.lt.s32.totalorder %s44_s21, %s44_s21 }
  0x16   :  { %v27_v4 = vmax.f32 %v25_v2, 0.0  ;;  %v28_v5 = vmax.f32 %v26_v3, 0.0  ;;  %p82_p8 = scmp.ne.s32.totalorder %s44_s21, %s81_s0  ;;  %p87_p10 = scmp.lt.s32.totalorder %s81_s0, %s81_s0 }
  0x18   :  { %v29_v6 = vmin.f32 %v27_v4, 6.0  ;;  %v30_v7 = vmin.f32 %v28_v5, 6.0  ;;  %p88_p11 = por %p87_p10, %p86_p9 }
  0x1a   :  { %v32_v8 = vmul.f32 0.16666667, %v29_v6  ;;  %v33_v9 = vmul.f32 0.16666667, %v30_v7  ;;  %p89_p12 = pnand %p88_p11, %p82_p8 }
  0x1c   :  { %v34_v10 = vmul.f32 %v32_v8, %v23_v0  ;;  %v35_v11 = vmul.f32 %v33_v9, %v24_v1 }
  0x1e   :  { %36 = vst [vmem:[#allocation5] sm:$0xff] %v34_v10  ;;  %37 = vst [vmem:[#allocation5 + $0x8] sm:$0xff] %v35_v11 }
  0x1f   :  { %92 = shalt.err (!%p89_p12)
}
  0x20   :  { %s93_s24 = scalar_lea.hbm %s152_s1, 256 }
  0x21   :  { %p94_p13 = scmp.ne.s32.totalorder %s152_s1, %s93_s24  ;;  %p97_p0 = scmp.lt.u32.totalorder %s93_s24, %s152_s1 }
  0x23   :  { %p99_p1 = pnand %p97_p0, %p94_p13 }
  0x25   :  { %102 = shalt.err (!%p99_p1)
}
  0x26   :  { %49 = dma.vmem_to_hbm [thread:$0]  %s44_s21, 256, %s152_s1, [#allocation4], %s108_s16, %s108_s16, %s109_s17  }
  0x27   :  { %105 = dma.done.wait [#allocation4], 256  }
  0x28   :  { %106 = vsyncadd [#allocation4], 4294967040 }
  0x29   :  { %53 = vsyncpa [#allocation3], 1 }
  0x2a   :  { %54 = vsyncpa [#allocation4], 1 }

</bundles_post_ra>
